<compile_context>
chip_gen: v5e
topology: v5e:2x2
jax: 0.10.0
libtpu: 0.0.40
codegen_flags: <defaults>
</compile_context>

<pallas_src>
import functools

import jax
import jax.numpy as jnp
from jax import lax
from jax.experimental import pallas as pl
from jax.experimental.pallas import tpu as pltpu

_LANE = 1024          # output last dim: large multiple of 128 (lane-dense)
_MAX_BLOCK_ROWS = 256 # 256 x 1024 x 4B = 1 MiB per tile -> ~4 MiB live with
                      # 2-deep buffering of in+out; fits default scoped VMEM
                      # on v5e (16 MiB) / v6e / v7x (32 MiB) with headroom.


def _i32(x: int) -> int:
    """Reinterpret a 32-bit pattern as a signed int32 Python value."""
    x &= 0xFFFFFFFF
    return x - (1 << 32) if x >= (1 << 31) else x


def _keep_threshold_biased(p: float) -> int:
    """Signed-compare threshold so that P(hash_u32 < thresh_u32) == 1 - p.

    Unsigned 'u < T' is rewritten as signed '(u ^ 0x80000000) < (T ^ 0x80000000)'
    so the kernel only needs signed int32 compares.
    """
    t = int(round((1.0 - p) * float(1 << 32)))
    t = max(0, min(t, (1 << 32) - 1))
    return _i32(t ^ 0x80000000)


def _dropout_kernel(seed_ref, v_ref, o_ref, *, p: float, block_elems: int):
    """Inverted dropout on one (block_rows, LANE) VMEM tile.

    keep ~ Bernoulli(1-p) from a stateless hash of (seed, flat index);
    out = keep * v / (1 - p).
    """
    shape = o_ref.shape
    lane = shape[-1]

    # Global flat element index of every element in this tile.
    base = pl.program_id(0) * block_elems
    row = lax.broadcasted_iota(jnp.int32, shape, 0)
    col = lax.broadcasted_iota(jnp.int32, shape, 1)
    idx = base + row * lane + col

    # lowbias32-style integer hash, seeded.  int32 arithmetic wraps (two's
    # complement), which is exactly what we want; shifts are logical.
    x = idx * jnp.int32(_i32(0x9E3779B9)) + seed_ref[0]
    x = x ^ lax.shift_right_logical(x, 16)
    x = x * jnp.int32(_i32(0x7FEB352D))
    x = x ^ lax.shift_right_logical(x, 15)
    x = x * jnp.int32(_i32(0x846CA68B))
    x = x ^ lax.shift_right_logical(x, 16)

    # Single threshold compare (unsigned compare via sign-bit bias trick).
    keep = (x ^ jnp.int32(_i32(0x80000000))) < jnp.int32(_keep_threshold_biased(p))

    v = v_ref[...]
    if p < 1.0:
        scale = jnp.asarray(1.0 / (1.0 - p), v.dtype)  # compute in v's dtype
        o_ref[...] = jnp.where(keep, v * scale, jnp.zeros_like(v))
    else:
        o_ref[...] = jnp.zeros_like(v)


def _dropout_2d(v2d: jax.Array, seed, p: float, block_rows: int) -> jax.Array:
    rows, lane = v2d.shape
    grid = rows // block_rows
    kernel = functools.partial(_dropout_kernel, p=float(p),
                               block_elems=block_rows * lane)
    return pl.pallas_call(
        kernel,
        out_shape=jax.ShapeDtypeStruct((rows, lane), v2d.dtype),
        grid_spec=pltpu.PrefetchScalarGridSpec(
            num_scalar_prefetch=1,  # seed lands in SMEM
            grid=(grid,),
            in_specs=[pl.BlockSpec((block_rows, lane),
                                   lambda i, seed_ref: (i, 0))],
            out_specs=pl.BlockSpec((block_rows, lane),
                                   lambda i, seed_ref: (i, 0)),
        ),
        compiler_params=pltpu.CompilerParams(
            dimension_semantics=("parallel",)),  # embarrassingly parallel rows
    )(jnp.asarray([seed], jnp.int32), v2d)


class NaDropout:
    """JAX/Pallas port of the PyTorch NaDropout module."""

    def __init__(self, p: float = 0.0):
        self.p = float(p)

    def __call__(self, d, *, training: bool = True, seed: int = 0):
        q = d["q"]
        v = d["v"]
        if (not training) or self.p == 0.0:
            v_out = v  # nn.Dropout is the identity here; skip the HBM pass.
        else:
            v_out = self._apply(v, seed)
        k = v_out  # k aliases the dropped-out v, exactly as in the reference.
        return {"q": q, "k": k, "v": v_out}

    def _apply(self, v: jax.Array, seed) -> jax.Array:
        orig_shape = v.shape
        total = int(v.size)
        lane = _LANE

        rows = -(-total // lane)                         # ceil
        block_rows = min(rows, _MAX_BLOCK_ROWS)
        rows_padded = -(-rows // block_rows) * block_rows
        pad = rows_padded * lane - total

        flat = v.reshape(-1)
        if pad:
            flat = jnp.pad(flat, (0, pad))
        v2d = flat.reshape(rows_padded, lane)

        out2d = _dropout_2d(v2d, seed, self.p, block_rows)
        return out2d.reshape(-1)[:total].reshape(orig_shape)


if __name__ == "__main__":
    key = jax.random.PRNGKey(0)
    kq, kv = jax.random.split(key)
    B, S, D = 2, 8, 32
    q = jax.random.normal(kq, (B, S, D), dtype=jnp.float32)
    v = jax.random.normal(kv, (B, S, D), dtype=jnp.float32)

    # Default module (p=0.0): dropout is the identity, kernel is skipped.
    mod0 = NaDropout()
    out0 = mod0({"q": q, "v": v}, training=True, seed=0)
    assert out0["q"].shape == q.shape and out0["v"].shape == v.shape
    assert jnp.allclose(out0["q"], q)
    assert jnp.array_equal(out0["v"], v)
    assert jnp.array_equal(out0["k"], out0["v"])

    # Non-trivial p: exercises the Pallas dropout kernel.
    mod = NaDropout(p=0.5)
    out = mod({"q": q, "v": v}, training=True, seed=123)
    jax.block_until_ready(out["v"])

    vo = out["v"]
    assert vo.shape == v.shape and vo.dtype == v.dtype
    assert jnp.allclose(out["q"], q)                      # q passthrough
    assert jnp.array_equal(out["k"], out["v"])            # k aliases v

    dropped = jnp.isclose(vo, 0.0)
    kept = ~dropped
    # Kept entries are scaled by exactly 1/(1-p).
    assert jnp.allclose(vo[kept], v[kept] / (1.0 - 0.5), atol=1e-5, rtol=1e-5)
    # Roughly half dropped (loose statistical bound over 512 elements).
    frac = float(jnp.mean(dropped.astype(jnp.float32)))
    assert 0.3 < frac < 0.7, f"unexpected drop fraction {frac}"

    print("KERNEL_OK")
</pallas_src>

<mosaic_0001>
module attributes {stable_mosaic.version = 11 : i64} {
  func.func @_dropout_kernel(%arg0: i32, %arg1: memref<1xi32, #tpu.memory_space<smem>>, %arg2: memref<1x1024xf32, #tpu.memory_space<vmem>>, %arg3: memref<1x1024xf32, #tpu.memory_space<vmem>>) attributes {dimension_semantics = [#tpu.dimension_semantics<parallel>], iteration_bounds = array<i64: 1>, scalar_prefetch = 1 : i64, scratch_operands = 0 : i64, tpu.core_type = #tpu.core_type<tc>, window_params = [{transform_indices = @transform_0, window_bounds = array<i64: 1, 1024>}, {transform_indices = @transform_1, window_bounds = array<i64: 1, 1024>}]} {
    %c1024_i32 = arith.constant 1024 : i32
    %0 = arith.muli %arg0, %c1024_i32 : i32
    %1 = tpu.iota {dimensions = array<i32: 0>} : vector<1x1024xi32>
    %2 = tpu.iota {dimensions = array<i32: 1>} : vector<1x1024xi32>
    %c1024_i32_0 = arith.constant 1024 : i32
    %3 = vector.broadcast %c1024_i32_0 : i32 to vector<1x1024xi32>
    %4 = arith.muli %1, %3 : vector<1x1024xi32>
    %5 = vector.broadcast %0 : i32 to vector<1x1024xi32>
    %6 = arith.addi %5, %4 : vector<1x1024xi32>
    %7 = arith.addi %6, %2 : vector<1x1024xi32>
    %c-1640531527_i32 = arith.constant -1640531527 : i32
    %8 = vector.broadcast %c-1640531527_i32 : i32 to vector<1x1024xi32>
    %9 = arith.muli %7, %8 : vector<1x1024xi32>
    %c0 = arith.constant 0 : index
    %10 = memref.load %arg1[%c0] : memref<1xi32, #tpu.memory_space<smem>>
    %11 = vector.broadcast %10 : i32 to vector<1x1024xi32>
    %12 = arith.addi %9, %11 : vector<1x1024xi32>
    %c16_i32 = arith.constant 16 : i32
    %13 = vector.broadcast %c16_i32 : i32 to vector<1x1024xi32>
    %14 = arith.shrui %12, %13 : vector<1x1024xi32>
    %15 = arith.xori %12, %14 : vector<1x1024xi32>
    %c2146121005_i32 = arith.constant 2146121005 : i32
    %16 = vector.broadcast %c2146121005_i32 : i32 to vector<1x1024xi32>
    %17 = arith.muli %15, %16 : vector<1x1024xi32>
    %c15_i32 = arith.constant 15 : i32
    %18 = vector.broadcast %c15_i32 : i32 to vector<1x1024xi32>
    %19 = arith.shrui %17, %18 : vector<1x1024xi32>
    %20 = arith.xori %17, %19 : vector<1x1024xi32>
    %c-2073254261_i32 = arith.constant -2073254261 : i32
    %21 = vector.broadcast %c-2073254261_i32 : i32 to vector<1x1024xi32>
    %22 = arith.muli %20, %21 : vector<1x1024xi32>
    %c16_i32_1 = arith.constant 16 : i32
    %23 = vector.broadcast %c16_i32_1 : i32 to vector<1x1024xi32>
    %24 = arith.shrui %22, %23 : vector<1x1024xi32>
    %25 = arith.xori %22, %24 : vector<1x1024xi32>
    %c-2147483648_i32 = arith.constant -2147483648 : i32
    %26 = vector.broadcast %c-2147483648_i32 : i32 to vector<1x1024xi32>
    %27 = arith.xori %25, %26 : vector<1x1024xi32>
    %c0_i32 = arith.constant 0 : i32
    %28 = vector.broadcast %c0_i32 : i32 to vector<1x1024xi32>
    %29 = arith.cmpi slt, %27, %28 : vector<1x1024xi32>
    %c0_2 = arith.constant 0 : index
    %c0_3 = arith.constant 0 : index
    %30 = vector.load %arg2[%c0_2, %c0_3] : memref<1x1024xf32, #tpu.memory_space<vmem>>, vector<1x1024xf32>
    %cst = arith.constant 2.000000e+00 : f32
    %31 = vector.broadcast %cst : f32 to vector<1x1024xf32>
    %32 = arith.mulf %30, %31 : vector<1x1024xf32>
    %cst_4 = arith.constant 0.000000e+00 : f32
    %33 = vector.broadcast %cst_4 : f32 to vector<1x1024xf32>
    %34 = arith.select %29, %32, %33 : vector<1x1024xi1>, vector<1x1024xf32>
    %c0_5 = arith.constant 0 : index
    %c0_6 = arith.constant 0 : index
    %35 = vector.load %arg3[%c0_5, %c0_6] : memref<1x1024xf32, #tpu.memory_space<vmem>>, vector<1x1024xf32>
    tpu.vector_store %arg3[%c0_5, %c0_6], %34 {strides = array<i32>} : memref<1x1024xf32, #tpu.memory_space<vmem>>, vector<1x1024xf32>,
    return
  }
  func.func @transform_0(%arg0: i32, %arg1: memref<1xi32, #tpu.memory_space<smem>>) -> (i32, i32) {
    %c0_i32 = arith.constant 0 : i32
    %c0_i32_0 = arith.constant 0 : i32
    return %arg0, %c0_i32 : i32, i32
  }
  func.func @transform_1(%arg0: i32, %arg1: memref<1xi32, #tpu.memory_space<smem>>) -> (i32, i32) {
    %c0_i32 = arith.constant 0 : i32
    %c0_i32_0 = arith.constant 0 : i32
    return %arg0, %c0_i32 : i32, i32
  }
}

</mosaic_0001>

<bundles_post_ra>
// kernel: tpu_custom_call.1
= control target key start
LH: loop header
LB: loop body
LE: loop exit
PB: predicated region body
PF: predicated region fallthrough
CT: control target
= control target key end

     0   :  { %8 = vsyncpa [#allocation5], 0  ;;  %s359_s0 = inlined_call_operand.<no memory space> [shape: s32[1], index: 0, kind: input, shape index: {}]   ;;  %s360_s1 = inlined_call_operand.hbm [shape: f32[1,1024], index: 1, kind: input, shape index: {}]   ;;  %s361_s2 = inlined_call_operand.hbm [shape: f32[1,1024], index: 2, kind: output, shape index: {}]  }
   0x1   :  { %9 = vsyncpa [#allocation6], 0  ;;  %s15_s11 = sshll.u32 %s360_s1, 4  ;;  %s275_s12 = smov [#allocation4]   ;;  %s16_s11 = int_to_ptr.hbm [resolvable:$true] %s15_s11 }
   0x2   :  { %s17_s13 = sshll.u32 %s275_s12, 4  ;;  %s18_s13 = int_to_ptr.vmem [resolvable:$true] %s17_s13 }
   0x3   :  { %20 = dma.hbm_to_vmem [thread:$0]  %s16_s11, 128, %s18_s13, [#allocation5]  }
   0x4   :  { %271 = dma.done.wait [#allocation5], 128  }
   0x5   :  { %272 = vsyncadd [#allocation5], 4294967168  ;;  %v26_v0 = vlaneseq  ;;  %v57_v11 = vstv %s359_s0  ;;  %v146_v12 = vld [vmem:[#allocation4] sm:$0xff]  ;;  %vm188_vm8 = vcmask 1040384   ;;  %vm190_vm9 = vcmask 1042434   ;;  %s276_s0 = smov [#allocation7]  }
   0x6   :  { %v298_v17 = vmul.f32 2.0, %v146_v12  ;;  %vm192_vm10 = vcmask 1041408   ;;  %s209_s15 = sshll.u32 %s276_s0, 4  ;;  %s211_s18 = sshll.u32 %s361_s2, 4  ;;  %vm194_vm11 = vcmask 1044484   ;;  %vm196_vm12 = vcmask 1046534   ;;  %s210_s15 = int_to_ptr.vmem [resolvable:$true] %s209_s15  ;;  %s212_s18 = int_to_ptr.hbm [resolvable:$true] %s211_s18 }
   0x7   :  { %v27_v1 = vshrl.u32 %v26_v0, 7  ;;  %v29_v2 = vand.u32 127, %v26_v0  ;;  %vm198_vm13 = vcmask 1045508   ;;  %vm200_vm14 = vcmask 1043456  }
   0x9   :  { %v30_v3 = vadd.s32 128, %v29_v2  ;;  %v31_v4 = vadd.s32 256, %v29_v2  ;;  %v32_v5 = vadd.s32 384, %v29_v2  ;;  %v33_v6 = vadd.s32 512, %v29_v2 }
   0xa   :  { %v34_v7 = vadd.s32 640, %v29_v2  ;;  %v35_v8 = vadd.s32 768, %v29_v2  ;;  %v36_v9 = vadd.s32 896, %v29_v2  ;;  %v37_v10 = vmul.u32 1024, %v27_v1 }
   0xc   :  { %v40_v13 = vadd.s32 %v37_v10, %v29_v2  ;;  %v41_v14 = vadd.s32 %v37_v10, %v30_v3  ;;  %v42_v15 = vadd.s32 %v37_v10, %v31_v4  ;;  %v43_v16 = vadd.s32 %v37_v10, %v32_v5 }
   0xd   :  { %v44_v18 = vadd.s32 %v37_v10, %v33_v6  ;;  %v45_v19 = vadd.s32 %v37_v10, %v34_v7  ;;  %v46_v20 = vadd.s32 %v37_v10, %v35_v8  ;;  %v47_v21 = vadd.s32 %v37_v10, %v36_v9 }
   0xe   :  { %v48_v22 = vmul.u32 2654435769, %v40_v13  ;;  %v49_v23 = vmul.u32 2654435769, %v41_v14  ;;  %v50_v24 = vmul.u32 2654435769, %v42_v15 }
   0xf   :  { %v51_v25 = vmul.u32 2654435769, %v43_v16  ;;  %v52_v26 = vmul.u32 2654435769, %v44_v18  ;;  %v53_v27 = vmul.u32 2654435769, %v45_v19 }
  0x10   :  { %v54_v28 = vmul.u32 2654435769, %v46_v20  ;;  %v55_v29 = vmul.u32 2654435769, %v47_v21  ;;  %v58_v30 = vadd.s32 %v57_v11, %v48_v22  ;;  %v59_v31 = vadd.s32 %v57_v11, %v49_v23 }
  0x11   :  { %v60_v32 = vadd.s32 %v57_v11, %v50_v24  ;;  %v61_v33 = vadd.s32 %v57_v11, %v51_v25  ;;  %v62_v34 = vadd.s32 %v57_v11, %v52_v26  ;;  %v63_v35 = vadd.s32 %v57_v11, %v53_v27 }
  0x12   :  { %v64_v36 = vadd.s32 %v57_v11, %v54_v28  ;;  %v65_v37 = vadd.s32 %v57_v11, %v55_v29  ;;  %v66_v38 = vshrl.u32 %v58_v30, 16  ;;  %v67_v39 = vshrl.u32 %v59_v31, 16 }
  0x13   :  { %v68_v40 = vshrl.u32 %v60_v32, 16  ;;  %v69_v41 = vshrl.u32 %v61_v33, 16  ;;  %v70_v42 = vshrl.u32 %v62_v34, 16  ;;  %v71_v43 = vshrl.u32 %v63_v35, 16 }
  0x14   :  { %v72_v44 = vshrl.u32 %v64_v36, 16  ;;  %v73_v45 = vshrl.u32 %v65_v37, 16  ;;  %v74_v46 = vxor.u32 %v66_v38, %v58_v30  ;;  %v75_v47 = vxor.u32 %v67_v39, %v59_v31 }
  0x15   :  { %v76_v48 = vxor.u32 %v68_v40, %v60_v32  ;;  %v77_v49 = vxor.u32 %v69_v41, %v61_v33  ;;  %v78_v50 = vxor.u32 %v70_v42, %v62_v34  ;;  %v79_v51 = vxor.u32 %v71_v43, %v63_v35 }
  0x16   :  { %v80_v52 = vxor.u32 %v72_v44, %v64_v36  ;;  %v81_v53 = vxor.u32 %v73_v45, %v65_v37  ;;  %v82_v54 = vmul.u32 2146121005, %v74_v46  ;;  %v83_v55 = vmul.u32 2146121005, %v75_v47 }
  0x17   :  { %v84_v56 = vmul.u32 2146121005, %v76_v48  ;;  %v85_v57 = vmul.u32 2146121005, %v77_v49  ;;  %v86_v58 = vmul.u32 2146121005, %v78_v50 }
  0x18   :  { %v87_v59 = vmul.u32 2146121005, %v79_v51  ;;  %v88_v60 = vmul.u32 2146121005, %v80_v52  ;;  %v89_v61 = vmul.u32 2146121005, %v81_v53 }
  0x19   :  { %v90_v62 = vshrl.u32 %v82_v54, 15  ;;  %v91_v63 = vshrl.u32 %v83_v55, 15  ;;  %v92_v0 = vshrl.u32 %v84_v56, 15  ;;  %v93_v1 = vshrl.u32 %v85_v57, 15 }
  0x1a   :  { %v94_v2 = vshrl.u32 %v86_v58, 15  ;;  %v95_v3 = vshrl.u32 %v87_v59, 15  ;;  %v96_v4 = vshrl.u32 %v88_v60, 15  ;;  %v97_v5 = vshrl.u32 %v89_v61, 15 }
  0x1b   :  { %v98_v6 = vxor.u32 %v90_v62, %v82_v54  ;;  %v99_v7 = vxor.u32 %v91_v63, %v83_v55  ;;  %v100_v8 = vxor.u32 %v92_v0, %v84_v56  ;;  %v101_v9 = vxor.u32 %v93_v1, %v85_v57 }
  0x1c   :  { %v102_v10 = vxor.u32 %v94_v2, %v86_v58  ;;  %v103_v11 = vxor.u32 %v95_v3, %v87_v59  ;;  %v104_v12 = vxor.u32 %v96_v4, %v88_v60  ;;  %v105_v13 = vxor.u32 %v97_v5, %v89_v61 }
  0x1d   :  { %v106_v14 = vmul.u32 2221713035, %v98_v6  ;;  %v107_v15 = vmul.u32 2221713035, %v99_v7  ;;  %v108_v16 = vmul.u32 2221713035, %v100_v8 }
  0x1e   :  { %v109_v18 = vmul.u32 2221713035, %v101_v9  ;;  %v110_v19 = vmul.u32 2221713035, %v102_v10  ;;  %v111_v20 = vmul.u32 2221713035, %v103_v11 }
  0x1f   :  { %v112_v21 = vmul.u32 2221713035, %v104_v12  ;;  %v113_v22 = vmul.u32 2221713035, %v105_v13  ;;  %v114_v23 = vshrl.u32 %v106_v14, 16  ;;  %v115_v24 = vshrl.u32 %v107_v15, 16 }
  0x20   :  { %v116_v25 = vshrl.u32 %v108_v16, 16  ;;  %v117_v26 = vshrl.u32 %v109_v18, 16  ;;  %v118_v27 = vshrl.u32 %v110_v19, 16  ;;  %v119_v28 = vshrl.u32 %v111_v20, 16 }
  0x21   :  { %v120_v29 = vshrl.u32 %v112_v21, 16  ;;  %v121_v30 = vshrl.u32 %v113_v22, 16  ;;  %v122_v31 = vxor.u32 %v114_v23, %v106_v14  ;;  %v123_v32 = vxor.u32 %v115_v24, %v107_v15 }
  0x22   :  { %v124_v33 = vxor.u32 %v116_v25, %v108_v16  ;;  %v125_v34 = vxor.u32 %v117_v26, %v109_v18  ;;  %v126_v35 = vxor.u32 %v118_v27, %v110_v19  ;;  %v127_v36 = vxor.u32 %v119_v28, %v111_v20 }
  0x23   :  { %v128_v37 = vxor.u32 %v120_v29, %v112_v21  ;;  %v129_v38 = vxor.u32 %v121_v30, %v113_v22  ;;  %v130_v39 = vxor.u32 2147483648, %v122_v31  ;;  %v131_v40 = vxor.u32 2147483648, %v123_v32 }
  0x24   :  { %v132_v41 = vxor.u32 2147483648, %v124_v33  ;;  %v133_v42 = vxor.u32 2147483648, %v125_v34  ;;  %v134_v43 = vxor.u32 2147483648, %v126_v35  ;;  %v135_v44 = vxor.u32 2147483648, %v127_v36 }
  0x25   :  { %v136_v45 = vxor.u32 2147483648, %v128_v37  ;;  %v137_v46 = vxor.u32 2147483648, %v129_v38  ;;  %vm300_vm0 = vcmp.lt.s32.totalorder %v130_v39, 0  ;;  %vm304_vm1 = vcmp.lt.s32.totalorder %v131_v40, 0 }
  0x26   :  { %vm308_vm2 = vcmp.lt.s32.totalorder %v132_v41, 0  ;;  %vm312_vm3 = vcmp.lt.s32.totalorder %v133_v42, 0  ;;  %vm316_vm4 = vcmp.lt.s32.totalorder %v134_v43, 0  ;;  %vm320_vm5 = vcmp.lt.s32.totalorder %v135_v44, 0 }
  0x27   :  { %vm324_vm6 = vcmp.lt.s32.totalorder %v136_v45, 0  ;;  %vm328_vm7 = vcmp.lt.s32.totalorder %v137_v46, 0  ;;  %v149_v55 = vperm.slane %v298_v17, 0  ;;  %v150_v56 = vperm.slane %v298_v17, 1 }
  0x28   :  { %v151_v57 = vperm.slane %v298_v17, 2  ;;  %v152_v58 = vperm.slane %v298_v17, 3  ;;  %v153_v59 = vperm.slane %v298_v17, 4  ;;  %v154_v60 = vperm.slane %v298_v17, 5 }
  0x29   :  { %v155_v61 = vperm.slane %v298_v17, 6  ;;  %v156_v62 = vperm.slane %v298_v17, 7  ;;  %v165_v63 = vsel %vm300_vm0, %v149_v55, 0.0  ;;  %v166_v0 = vsel %vm304_vm1, %v150_v56, 0.0 }
  0x2a   :  { %v167_v1 = vsel %vm308_vm2, %v151_v57, 0.0  ;;  %v168_v2 = vsel %vm312_vm3, %v152_v58, 0.0  ;;  %v169_v3 = vsel %vm316_vm4, %v153_v59, 0.0  ;;  %v170_v4 = vsel %vm320_vm5, %v154_v60, 0.0 }
  0x2b   :  { %v171_v17 = vsel %vm324_vm6, %v155_v61, 0.0  ;;  %v172_v5 = vsel %vm328_vm7, %v156_v62, 0.0  ;;  %v181_v6 = vrot.slane %v166_v0, 7  ;;  %v182_v7 = vrot.slane %v167_v1, 6 }
  0x2c   :  { %v183_v8 = vrot.slane %v168_v2, 5  ;;  %v184_v9 = vrot.slane %v169_v3, 4  ;;  %v185_v10 = vrot.slane %v170_v4, 3  ;;  %v186_v11 = vrot.slane %v171_v17, 2 }
  0x2d   :  { %v187_v12 = vrot.slane %v172_v5, 1  ;;  %v189_v13 = vsel %vm188_vm8, %v165_v63, %v181_v6 }
  0x2e   :  { %v191_v14 = vsel %vm190_vm9, %v182_v7, %v183_v8  ;;  %v195_v16 = vsel %vm194_vm11, %v184_v9, %v185_v10 }
  0x2f   :  { %v193_v15 = vsel %vm192_vm10, %v189_v13, %v191_v14  ;;  %v197_v18 = vsel %vm196_vm12, %v186_v11, %v187_v12 }
  0x30   :  { %v199_v19 = vsel %vm198_vm13, %v195_v16, %v197_v18 }
  0x31   :  { %v201_v20 = vsel %vm200_vm14, %v193_v15, %v199_v19 }
  0x32   :  { %203 = vst [vmem:[#allocation7] sm:$0xff] %v201_v20 }
  0x33   :  { %214 = dma.vmem_to_hbm [thread:$0]  %s210_s15, 128, %s212_s18, [#allocation6]  }
  0x34   :  { %273 = dma.done.wait [#allocation6], 128  }
  0x35   :  { %274 = vsyncadd [#allocation6], 4294967168 }
  0x36   :  { %219 = vsyncpa [#allocation5], 1 }
  0x37   :  { %220 = vsyncpa [#allocation6], 1 }

</bundles_post_ra>
